<compile_context>
chip_gen: v7x
topology: tpu7x:2x2x1
jax: 0.10.0
libtpu: 0.0.40
codegen_flags: <defaults>
</compile_context>

<pallas_src>
import functools

import jax
import jax.numpy as jnp
from jax.experimental import pallas as pl
from jax.experimental.pallas import tpu as pltpu


def _kernel(x_ref, wd_ref, bd_ref, w1_ref, b1_ref, o_ref, xp_ref,
            *, t_tile, dilation, h_pad, cin):
    # x_ref  : (1, Cin, T_TILE)        current input time tile
    # wd_ref : (3, Cout, Cin)          dilated-conv taps (tap-major)
    # bd_ref : (Cout, 1)
    # w1_ref : (Cout, Cout)            1x1 conv
    # b1_ref : (Cout, 1)
    # o_ref  : (1, Cout, T_TILE)
    # xp_ref : (Cin, h_pad + T_TILE)   persistent scratch:
    #          [ history pad (h_pad cols, 128-aligned) | current tile ].
    #          The 2*d columns immediately before the current tile live at
    #          xp[:, h_pad-2d : h_pad]; columns before that are never read.
    d = dilation
    t_idx = pl.program_id(1)

    @pl.when(t_idx == 0)
    def _init():
        # Sequence start: causal zero padding (aligned full-width store).
        xp_ref[:, :h_pad] = jnp.zeros((cin, h_pad), jnp.float32)

    @pl.when(t_idx > 0)
    def _shift():
        # Roll the causal history forward by t_tile columns (aligned copy).
        # Correct even when 2*d > t_tile (history spans multiple past tiles).
        xp_ref[:, :h_pad] = xp_ref[:, t_tile:t_tile + h_pad]

    cur = x_ref[0]                          # (Cin, T_TILE): read from HBM once
    xp_ref[:, h_pad:] = cur                 # lane-aligned store (h_pad % 128 == 0)

    # Causal dilated conv (kernel = 3): out[:, t] = sum_k W_k @ stream[:, t + k*d]
    # where stream has 2*d leading zeros.  Tap k=2 is exactly `cur`.
    acc = jnp.dot(wd_ref[2], cur, preferred_element_type=jnp.float32)
    acc = acc + jnp.dot(wd_ref[1], xp_ref[:, h_pad - d:h_pad - d + t_tile],
                        preferred_element_type=jnp.float32)
    acc = acc + jnp.dot(wd_ref[0], xp_ref[:, h_pad - 2 * d:h_pad - 2 * d + t_tile],
                        preferred_element_type=jnp.float32)

    h = jnp.maximum(acc + bd_ref[...], 0.0)                       # bias + ReLU
    out = jnp.dot(w1_ref[...], h,
                  preferred_element_type=jnp.float32) + b1_ref[...]   # 1x1 conv
    # dropout: identity (eval mode)
    o_ref[0] = cur + out                                          # residual add


def dilated_residual_layer(x, wd, bd, w1, b1, *, dilation, causal_conv=True,
                           max_time_tile=4096):
    """Forward pass of MSTCN DilatedResidualLayer (eval mode).

    x : (B, C, T) float32 in PyTorch Conv1d layout.
    wd: (Cout, Cin, 3) conv_dilated weight,  bd: (Cout,) bias.
    w1: (Cout, Cout, 1) conv_1x1 weight,     b1: (Cout,) bias.
    """
    assert causal_conv, "only the causal branch of the module is implemented"
    B, Cin, T = x.shape
    Cout = wd.shape[0]
    assert Cin == Cout, "residual add requires in_channels == out_channels"
    d = int(dilation)

    # ---- time tiling: large lane-dense tiles, T padded up to a tile multiple ----
    cap = max(128, min((max_time_tile // 128) * 128,
                       ((1 << 20) // max(Cin, 1)) // 128 * 128))
    if T <= cap:
        t_tile, t_pad = T, T
    else:
        t_tile = cap
        t_pad = pl.cdiv(T, t_tile) * t_tile
    n_t = t_pad // t_tile
    xw = x if t_pad == T else jnp.pad(x, ((0, 0), (0, 0), (0, t_pad - T)))

    # 128-aligned width reserved for the causal history in the xp scratch.
    h_pad = ((2 * d + 127) // 128) * 128

    # ---- parameter layouts for in-kernel matmuls ----
    wd_t = jnp.transpose(wd, (2, 0, 1))          # (3, Cout, Cin): tap-major slabs
    bd_c = bd.reshape(Cout, 1)
    w1_m = w1.reshape(Cout, Cout)
    b1_c = b1.reshape(Cout, 1)

    kernel = functools.partial(_kernel, t_tile=t_tile, dilation=d,
                               h_pad=h_pad, cin=Cin)

    # Rough VMEM budget: double-buffered in/out streams + scratch + params + slack.
    est = 4 * (2 * Cin * t_tile + 2 * Cout * t_tile + Cin * (h_pad + t_tile)
               + 2 * (3 * Cout * Cin + Cout * Cout + 2 * Cout)) + (4 << 20)
    vmem_limit = int(min(max(est, 32 << 20), 128 << 20))

    out = pl.pallas_call(
        kernel,
        out_shape=jax.ShapeDtypeStruct((B, Cout, t_pad), jnp.float32),
        grid_spec=pltpu.PrefetchScalarGridSpec(
            num_scalar_prefetch=0,
            grid=(B, n_t),
            in_specs=[
                pl.BlockSpec((1, Cin, t_tile), lambda b, t: (b, 0, t)),
                pl.BlockSpec((3, Cout, Cin), lambda b, t: (0, 0, 0)),
                pl.BlockSpec((Cout, 1), lambda b, t: (0, 0)),
                pl.BlockSpec((Cout, Cout), lambda b, t: (0, 0)),
                pl.BlockSpec((Cout, 1), lambda b, t: (0, 0)),
            ],
            out_specs=pl.BlockSpec((1, Cout, t_tile), lambda b, t: (b, 0, t)),
            scratch_shapes=[pltpu.VMEM((Cin, h_pad + t_tile), jnp.float32)],
        ),
        compiler_params=pltpu.CompilerParams(
            # Batch rows are independent (megacore-parallel); the time axis
            # carries the causal history sequentially.
            dimension_semantics=("parallel", "arbitrary"),
            vmem_limit_bytes=vmem_limit),
    )(xw, wd_t, bd_c, w1_m, b1_c)

    return out if t_pad == T else out[:, :, :T]


def _reference(x, wd, bd, w1, b1, dilation):
    # Pure-JAX reference of the PyTorch forward (eval mode).
    d = dilation
    out = jax.lax.conv_general_dilated(
        x, wd, window_strides=(1,), padding=[(2 * d, 2 * d)],
        rhs_dilation=(d,), dimension_numbers=("NCH", "OIH", "NCH"),
        precision=jax.lax.Precision.HIGHEST)
    out = out + bd[None, :, None]
    out = jax.nn.relu(out)
    out = out[:, :, :-(2 * d)]
    out = jax.lax.conv_general_dilated(
        out, w1, window_strides=(1,), padding=[(0, 0)],
        dimension_numbers=("NCH", "OIH", "NCH"),
        precision=jax.lax.Precision.HIGHEST)
    out = out + b1[None, :, None]
    return x + out


def _run_case(key, B, C, T, dilation, max_time_tile=4096):
    kx, kwd, kbd, kw1, kb1 = jax.random.split(key, 5)
    x = jax.random.normal(kx, (B, C, T), jnp.float32)
    # Conv1d(in=C, out=C, kernel=3): weight (C, C, 3), bias (C,)
    wd = jax.random.normal(kwd, (C, C, 3), jnp.float32) * 0.1
    bd = jax.random.normal(kbd, (C,), jnp.float32) * 0.1
    # Conv1d(C, C, 1): weight (C, C, 1), bias (C,)
    w1 = jax.random.normal(kw1, (C, C, 1), jnp.float32) * 0.1
    b1 = jax.random.normal(kb1, (C,), jnp.float32) * 0.1

    y = dilated_residual_layer(x, wd, bd, w1, b1, dilation=dilation,
                               max_time_tile=max_time_tile)
    y = jax.block_until_ready(y)
    y_ref = _reference(x, wd, bd, w1, b1, dilation)
    assert y.shape == (B, C, T)
    assert jnp.allclose(y, y_ref, atol=2e-4, rtol=2e-4), \
        f"mismatch: max abs err = {jnp.max(jnp.abs(y - y_ref))}"


if __name__ == "__main__":
    key = jax.random.PRNGKey(0)
    k1, k2, k3, k4 = jax.random.split(key, 4)

    # Tiny shape, single time tile, channels below sublane width.
    _run_case(k1, B=2, C=4, T=16, dilation=2)

    # Multi-tile path (4 time tiles): exercises the rolled causal history.
    _run_case(k2, B=2, C=8, T=512, dilation=4, max_time_tile=128)

    # Deep dilation: causal halo (2d = 192) wider than the time tile (128).
    _run_case(k3, B=1, C=8, T=384, dilation=96, max_time_tile=128)

    # T not a multiple of the tile: wrapper pads to 384 and slices back to 300.
    _run_case(k4, B=2, C=8, T=300, dilation=8, max_time_tile=128)

    print("KERNEL_OK")
</pallas_src>

<mosaic_0001>
module attributes {stable_mosaic.version = 11 : i64} {
  func.func @_kernel(%arg0: i32, %arg1: i32, %arg2: memref<1x4x16xf32, #tpu.memory_space<vmem>>, %arg3: memref<3x4x4xf32, #tpu.memory_space<vmem>>, %arg4: memref<4x1xf32, #tpu.memory_space<vmem>>, %arg5: memref<4x4xf32, #tpu.memory_space<vmem>>, %arg6: memref<4x1xf32, #tpu.memory_space<vmem>>, %arg7: memref<1x4x16xf32, #tpu.memory_space<vmem>>, %arg8: memref<4x144xf32, #tpu.memory_space<vmem>>) attributes {dimension_semantics = [#tpu.dimension_semantics<parallel>, #tpu.dimension_semantics<arbitrary>], iteration_bounds = array<i64: 2, 1>, scalar_prefetch = 0 : i64, scratch_operands = 1 : i64, tpu.core_type = #tpu.core_type<tc>, window_params = [{transform_indices = @transform_0, window_bounds = array<i64: 1, 4, 16>}, {pipeline_mode = #tpu.pipeline_mode<synchronous>, transform_indices = @transform_1, window_bounds = array<i64: 3, 4, 4>}, {pipeline_mode = #tpu.pipeline_mode<synchronous>, transform_indices = @transform_2, window_bounds = array<i64: 4, 1>}, {pipeline_mode = #tpu.pipeline_mode<synchronous>, transform_indices = @transform_3, window_bounds = array<i64: 4, 4>}, {pipeline_mode = #tpu.pipeline_mode<synchronous>, transform_indices = @transform_4, window_bounds = array<i64: 4, 1>}, {transform_indices = @transform_5, window_bounds = array<i64: 1, 4, 16>}]} {
    %c0_i32 = arith.constant 0 : i32
    %0 = arith.cmpi eq, %arg1, %c0_i32 : i32
    %1 = arith.extui %0 : i1 to i32
    %c0_i32_0 = arith.constant 0 : i32
    %2 = arith.cmpi ne, %1, %c0_i32_0 : i32
    scf.if %2 {
      %cst_28 = arith.constant 0.000000e+00 : f32
      %36 = vector.broadcast %cst_28 : f32 to vector<4x128xf32>
      %c0_29 = arith.constant 0 : index
      %c0_30 = arith.constant 0 : index
      %37 = vector.load %arg8[%c0_29, %c0_30] : memref<4x144xf32, #tpu.memory_space<vmem>>, vector<4x128xf32>
      tpu.vector_store %arg8[%c0_29, %c0_30], %36 {strides = array<i32>} : memref<4x144xf32, #tpu.memory_space<vmem>>, vector<4x128xf32>,
    } else {
    }
    %c0_i32_1 = arith.constant 0 : i32
    %3 = arith.cmpi sgt, %arg1, %c0_i32_1 : i32
    %4 = arith.extui %3 : i1 to i32
    %c0_i32_2 = arith.constant 0 : i32
    %5 = arith.cmpi ne, %4, %c0_i32_2 : i32
    scf.if %5 {
      %c0_28 = arith.constant 0 : index
      %c16 = arith.constant 16 : index
      %36 = vector.load %arg8[%c0_28, %c16] : memref<4x144xf32, #tpu.memory_space<vmem>>, vector<4x128xf32>
      %c0_29 = arith.constant 0 : index
      %c0_30 = arith.constant 0 : index
      %37 = vector.load %arg8[%c0_29, %c0_30] : memref<4x144xf32, #tpu.memory_space<vmem>>, vector<4x128xf32>
      tpu.vector_store %arg8[%c0_29, %c0_30], %36 {strides = array<i32>} : memref<4x144xf32, #tpu.memory_space<vmem>>, vector<4x128xf32>,
    } else {
    }
    %c0 = arith.constant 0 : index
    %c0_3 = arith.constant 0 : index
    %c0_4 = arith.constant 0 : index
    %6 = vector.load %arg2[%c0, %c0_3, %c0_4] : memref<1x4x16xf32, #tpu.memory_space<vmem>>, vector<1x4x16xf32>
    %7 = vector.shape_cast %6 : vector<1x4x16xf32> to vector<4x16xf32>
    %c0_5 = arith.constant 0 : index
    %c128 = arith.constant 128 : index
    %8 = vector.load %arg8[%c0_5, %c128] : memref<4x144xf32, #tpu.memory_space<vmem>>, vector<4x16xf32>
    tpu.vector_store %arg8[%c0_5, %c128], %7 {strides = array<i32>} : memref<4x144xf32, #tpu.memory_space<vmem>>, vector<4x16xf32>,
    %c2 = arith.constant 2 : index
    %c0_6 = arith.constant 0 : index
    %c0_7 = arith.constant 0 : index
    %9 = vector.load %arg3[%c2, %c0_6, %c0_7] : memref<3x4x4xf32, #tpu.memory_space<vmem>>, vector<1x4x4xf32>
    %10 = vector.shape_cast %9 : vector<1x4x4xf32> to vector<4x4xf32>
    %cst = arith.constant dense<0.000000e+00> : vector<4x16xf32>
    %11 = tpu.matmul %10, %7, %cst {dimension_numbers = #tpu.dot_dimension_numbers<[1], [0], [0], [1], [0, 0, 1, 1], [], []>} : vector<4x4xf32>, vector<4x16xf32>, vector<4x16xf32> -> vector<4x16xf32>
    %c1 = arith.constant 1 : index
    %c0_8 = arith.constant 0 : index
    %c0_9 = arith.constant 0 : index
    %12 = vector.load %arg3[%c1, %c0_8, %c0_9] : memref<3x4x4xf32, #tpu.memory_space<vmem>>, vector<1x4x4xf32>
    %13 = vector.shape_cast %12 : vector<1x4x4xf32> to vector<4x4xf32>
    %c0_10 = arith.constant 0 : index
    %c126 = arith.constant 126 : index
    %14 = vector.load %arg8[%c0_10, %c126] : memref<4x144xf32, #tpu.memory_space<vmem>>, vector<4x16xf32>
    %cst_11 = arith.constant dense<0.000000e+00> : vector<4x16xf32>
    %15 = tpu.matmul %13, %14, %cst_11 {dimension_numbers = #tpu.dot_dimension_numbers<[1], [0], [0], [1], [0, 0, 1, 1], [], []>} : vector<4x4xf32>, vector<4x16xf32>, vector<4x16xf32> -> vector<4x16xf32>
    %16 = arith.addf %11, %15 : vector<4x16xf32>
    %c0_12 = arith.constant 0 : index
    %c0_13 = arith.constant 0 : index
    %c0_14 = arith.constant 0 : index
    %17 = vector.load %arg3[%c0_12, %c0_13, %c0_14] : memref<3x4x4xf32, #tpu.memory_space<vmem>>, vector<1x4x4xf32>
    %18 = vector.shape_cast %17 : vector<1x4x4xf32> to vector<4x4xf32>
    %c0_15 = arith.constant 0 : index
    %c124 = arith.constant 124 : index
    %19 = vector.load %arg8[%c0_15, %c124] : memref<4x144xf32, #tpu.memory_space<vmem>>, vector<4x16xf32>
    %cst_16 = arith.constant dense<0.000000e+00> : vector<4x16xf32>
    %20 = tpu.matmul %18, %19, %cst_16 {dimension_numbers = #tpu.dot_dimension_numbers<[1], [0], [0], [1], [0, 0, 1, 1], [], []>} : vector<4x4xf32>, vector<4x16xf32>, vector<4x16xf32> -> vector<4x16xf32>
    %21 = arith.addf %16, %20 : vector<4x16xf32>
    %c0_17 = arith.constant 0 : index
    %c0_18 = arith.constant 0 : index
    %22 = vector.load %arg4[%c0_17, %c0_18] : memref<4x1xf32, #tpu.memory_space<vmem>>, vector<4x1xf32>
    %23 = vector.broadcast %22 : vector<4x1xf32> to vector<4x16xf32>
    %24 = arith.addf %21, %23 : vector<4x16xf32>
    %cst_19 = arith.constant 0.000000e+00 : f32
    %25 = vector.broadcast %cst_19 : f32 to vector<4x16xf32>
    %26 = arith.maximumf %24, %25 : vector<4x16xf32>
    %c0_20 = arith.constant 0 : index
    %c0_21 = arith.constant 0 : index
    %27 = vector.load %arg5[%c0_20, %c0_21] : memref<4x4xf32, #tpu.memory_space<vmem>>, vector<4x4xf32>
    %cst_22 = arith.constant dense<0.000000e+00> : vector<4x16xf32>
    %28 = tpu.matmul %27, %26, %cst_22 {dimension_numbers = #tpu.dot_dimension_numbers<[1], [0], [0], [1], [0, 0, 1, 1], [], []>} : vector<4x4xf32>, vector<4x16xf32>, vector<4x16xf32> -> vector<4x16xf32>
    %c0_23 = arith.constant 0 : index
    %c0_24 = arith.constant 0 : index
    %29 = vector.load %arg6[%c0_23, %c0_24] : memref<4x1xf32, #tpu.memory_space<vmem>>, vector<4x1xf32>
    %30 = vector.broadcast %29 : vector<4x1xf32> to vector<4x16xf32>
    %31 = arith.addf %28, %30 : vector<4x16xf32>
    %32 = arith.addf %7, %31 : vector<4x16xf32>
    %c0_25 = arith.constant 0 : index
    %c0_26 = arith.constant 0 : index
    %c0_27 = arith.constant 0 : index
    %33 = vector.load %arg7[%c0_25, %c0_26, %c0_27] : memref<1x4x16xf32, #tpu.memory_space<vmem>>, vector<1x4x16xf32>
    %34 = vector.shape_cast %33 : vector<1x4x16xf32> to vector<4x16xf32>
    %35 = vector.shape_cast %32 : vector<4x16xf32> to vector<1x4x16xf32>
    tpu.vector_store %arg7[%c0_25, %c0_26, %c0_27], %35 {strides = array<i32>} : memref<1x4x16xf32, #tpu.memory_space<vmem>>, vector<1x4x16xf32>,
    return
  }
  func.func @transform_0(%arg0: i32, %arg1: i32) -> (i32, i32, i32) {
    %c0_i32 = arith.constant 0 : i32
    %c0_i32_0 = arith.constant 0 : i32
    return %arg0, %c0_i32, %arg1 : i32, i32, i32
  }
  func.func @transform_1(%arg0: i32, %arg1: i32) -> (i32, i32, i32) {
    %c0_i32 = arith.constant 0 : i32
    %c0_i32_0 = arith.constant 0 : i32
    %c0_i32_1 = arith.constant 0 : i32
    %c0_i32_2 = arith.constant 0 : i32
    return %c0_i32, %c0_i32_0, %c0_i32_1 : i32, i32, i32
  }
  func.func @transform_2(%arg0: i32, %arg1: i32) -> (i32, i32) {
    %c0_i32 = arith.constant 0 : i32
    %c0_i32_0 = arith.constant 0 : i32
    %c0_i32_1 = arith.constant 0 : i32
    return %c0_i32, %c0_i32_0 : i32, i32
  }
  func.func @transform_3(%arg0: i32, %arg1: i32) -> (i32, i32) {
    %c0_i32 = arith.constant 0 : i32
    %c0_i32_0 = arith.constant 0 : i32
    %c0_i32_1 = arith.constant 0 : i32
    return %c0_i32, %c0_i32_0 : i32, i32
  }
  func.func @transform_4(%arg0: i32, %arg1: i32) -> (i32, i32) {
    %c0_i32 = arith.constant 0 : i32
    %c0_i32_0 = arith.constant 0 : i32
    %c0_i32_1 = arith.constant 0 : i32
    return %c0_i32, %c0_i32_0 : i32, i32
  }
  func.func @transform_5(%arg0: i32, %arg1: i32) -> (i32, i32, i32) {
    %c0_i32 = arith.constant 0 : i32
    %c0_i32_0 = arith.constant 0 : i32
    return %arg0, %c0_i32, %arg1 : i32, i32, i32
  }
}

</mosaic_0001>

<bundles_post_ra>
// kernel: tpu_custom_call.1
= control target key start
LH: loop header
LB: loop body
LE: loop exit
PB: predicated region body
PF: predicated region fallthrough
CT: control target
= control target key end

     0   :  { %10 = vsyncpa [#allocation4], 0  ;;  %s1203_s0 = inlined_call_operand.hbm [shape: f32[2,4,16], index: 0, kind: input, shape index: {}]   ;;  %s1204_s1 = inlined_call_operand.vmem [shape: f32[3,4,4], index: 1, kind: input, shape index: {}]   ;;  %s1205_s2 = inlined_call_operand.vmem [shape: f32[4,1], index: 2, kind: input, shape index: {}]   ;;  %s1206_s3 = inlined_call_operand.vmem [shape: f32[4,4], index: 3, kind: input, shape index: {}]   ;;  %s1207_s4 = inlined_call_operand.vmem [shape: f32[4,1], index: 4, kind: input, shape index: {}]   ;;  %s1208_s5 = inlined_call_operand.hbm [shape: f32[2,4,16], index: 5, kind: output, shape index: {}]  }
   0x1   :  { %12 = vsyncpa [#allocation4 + $0x1], 0 }
   0x2   :  { %13 = vsyncpa [#allocation5], 0 }
   0x3   :  { %15 = vsyncpa [#allocation5 + $0x1], 0  ;;  %s989_s18 = smov 0   ;;  %s991_s19 = smov 0  }
   0x4   :  { %s993_s20 = smov 0   ;;  %s995_s21 = smov 0  }
   0x5   :  { %s997_s22 = smov 0   ;;  %s999_s23 = smov 0  }
   0x6 LB: > { %s717_s24 = sadd.s32 4294967295, %s950_s23   ;;  %s718_s25 = sadd.s32 4294967294, %s950_s23   ;;  %s950_s23 = sphi %s999_s23, %s21_s23   ;;  %s946_s22 = sphi %s997_s22, %s1224_s22   ;;  %s942_s21 = sphi %s995_s21, %s1223_s21   ;;  %s938_s20 = sphi %s993_s20, %s1222_s20   ;;  %s934_s19 = sphi %s991_s19, %s1221_s19   ;;  %s930_s18 = sphi %s989_s18, %s1220_s18  }
   0x7   : > { %s33_s26 = sadd.s32 1, %s946_s22  ;;  %s42_s27 = sadd.s32 1, %s938_s20 }
   0x8   : > { %p35_p0 = scmp.ge.s32.totalorder %s33_s26, 2  ;;  %p49_p1 = scmp.ne.s32.totalorder %s938_s20, %s934_s19 }
   0x9   : > { %p50_p2 = scmp.eq.s32.totalorder %s950_s23, 0  ;;  %p55_p3 = scmp.ne.s32.totalorder %s934_s19, %s930_s18 }
   0xa   : > { %s1226_s26 = smov (%p35_p0, %s33_s26), 0  ;;  %p56_p5 = scmp.eq.s32.totalorder %s717_s24, 0 }
   0xb   : > { %p1030_p4 = por %p50_p2, %p49_p1  ;;  %s37_s29 = ssub.s32 %s946_s22, %s1226_s26 }
   0xc   : > { %p165_p6 = scmp.eq.s32.totalorder %s717_s24, 1  ;;  %p40_p7 = scmp.eq.s32.totalorder %s37_s29, 0 }
   0xd   : > { %p1036_p8 = por %p56_p5, %p55_p3  ;;  %p171_p10 = scmp.eq.s32.totalorder %s718_s25, 1 }
   0xe   : > { %p1040_p9 = por %p165_p6, %p49_p1  ;;  %p780_p13 = scmp.lt.s32.totalorder %s950_s23, 2 }
   0xf   : > { %s1045_s7 = scalar_select %p40_p7, %s938_s20, %s42_s27  }
  0x10   : > { %s1212_s6 = scalar_select %p1040_p9, 1, 0 }
  0x11   : > { %p1047_p11 = por %p171_p10, %p55_p3  ;;  %s203_s9 = sand.u32 1, %s938_s20  }
  0x12   : > { %s721_s10 = sshll.u32 %s203_s9, 2  ;;  %s722_s11 = sshll.u32 %s946_s22, 6 }
  0x13   : > { %s1213_s8 = scalar_select %p1047_p11, 1, 0 }
  0x14   : > { %s1058_s14 = scalar_lea.hbm %s1203_s0, %s722_s11  ;;  %s207_s15 = scalar_lea.vmem [#allocation3], %s721_s10 }
  0x15   : > { %s215_s16 = sshll.u32 %s207_s15, 4  ;;  %p1064_p0 = pnand %p780_p13, %p1030_p4  ;;  %s1060_s16 = int_to_ptr.vmem [resolvable:$true] %s215_s16 }
  0x16   : > { %s204_s24 = scalar_lea.sflag [#allocation4], %s203_s9  ;;  %s838_s25 = scalar_lea.hbm %s1058_s14, 64 }
  0x17   : > { %p839_p3 = scmp.ne.s32.totalorder %s1058_s14, %s838_s25  ;;  %p840_p5 = pneg %p1064_p0 }
  0x18   : > { %s843_s28 = scalar_lea.hbm %s1203_s0, 128  ;;  %p844_p4 = scmp.lt.u32.totalorder %s1058_s14, %s1203_s0 }
  0x19   : > { %p841_p6 = pnand %p840_p5, %p839_p3  ;;  %p845_p10 = scmp.lt.u32.totalorder %s843_s28, %s838_s25 }
  0x1a   : > { %p847_p12 = scmp.lt.u32.totalorder %s838_s25, %s1058_s14 }
  0x1b   : > { %p842_p7 = pneg %p841_p6  ;;  %p846_p13 = por %p845_p10, %p844_p4 }
  0x1d   : > { %p848_p1 = por %p847_p12, %p846_p13 }
  0x1f   : > { %p849_p2 = pnand %p848_p1, %p842_p7 }
  0x21   : > { %852 = shalt.err (!%p849_p2)
}
  0x22   : > { %s853_s9 = scalar_lea.vmem %s1060_s16, 64  ;;  %s952_s12 = smov [#allocation3]  }
  0x23   : > { %p854_p3 = scmp.ne.s32.totalorder %s1060_s16, %s853_s9  ;;  %s858_s13 = sshll.u32 %s952_s12, 4  ;;  %s859_s13 = int_to_ptr.vmem [resolvable:$false] %s858_s13 }
  0x24   : > { %s860_s15 = scalar_lea.vmem %s859_s13, 128  ;;  %p861_p9 = scmp.lt.s32.totalorder %s1060_s16, %s859_s13 }
  0x25   : > { %p856_p6 = pnand %p854_p3, %p840_p5  ;;  %p862_p4 = scmp.lt.s32.totalorder %s860_s15, %s853_s9 }
  0x27   : > { %p857_p11 = pneg %p856_p6  ;;  %p863_p10 = por %p862_p4, %p861_p9 }
  0x29   : > { %p864_p12 = pnand %p863_p10, %p857_p11 }
  0x2b   : > { %867 = shalt.err (!%p864_p12)
}
  0x2c   : > { %775 = dma.hbm_to_vmem [thread:$0]  (!%p1064_p0), %s1058_s14, 64, %s1060_s16, %s204_s24  }
  0x2d   : > { %p1215_p1 = scmp.lt.s32.totalorder %s950_s23, 3  ;;  %p1216_p2 = scmp.ge.s32.totalorder %s950_s23, 1 }
  0x2f   : > { %p221_p5 = pnand %p1216_p2, %p1215_p1 }
  0x30   : > { %s1100_s25 = sand.u32 (!%p221_p5), 1, %s934_s19  }
  0x31   : > { %224 = sbr.rel (%p221_p5) target bundleno = 640 (0x280), region = 40  ;;  %s724_s27 = sshll.u32 (!%p221_p5), %s1100_s25, 2 }
  0x32   : > { %s227_s29 = scalar_lea.sflag (!%p221_p5), [#allocation4], %s1100_s25  ;;  %s230_s17 = scalar_lea.vmem (!%p221_p5), [#allocation3], %s724_s27 }
  0x38   : > { %921 = dma.done.wait (%p1036_p8), %s227_s29, 64  }
  0x39   : > { %923 = vsyncadd (%p1036_p8), %s227_s29, 4294967232  ;;  %v953_v0 = vmov 0.0   ;;  %vm276_vm0 = vcmask 125952   ;;  %v1110_v1 = vld [vmem:[%s230_s17] sm:$0xf]  ;;  %vm295_vm1 = vcmask 1043456  }
  0x3a   : > { %261 = vst [vmem:[#allocation2] sm:$0xf] %v953_v0  ;;  %748 = vmatprep.subr.mxu0 %v953_v0  ;;  %753 = vmatprep.subr.mxu1 %v953_v0  ;;  %277 = vst.msk [vmem:[#allocation2 + $0x4] sm:$0xf] %vm276_vm0, %v1110_v1  ;;  %vm954_vm2 = vmmov 0   ;;  %vm291_vm3 = vcmask 31744  }
  0x3b   : > { %750 = vmatprep.mubr.msk.f32.mxu0 %vm954_vm2, %v953_v0  ;;  %754 = vmatpush3.msk.msra.mxu1 %vm295_vm1, %v1110_v1  ;;  %v726_v2 = vld [vmem:[%s1204_s1 + $0x8] sm:$0xf]  ;;  %v955_v3 = vmov 0   ;;  %s956_s16 = smov 4   ;;  %s957_s24 = smov 2   ;;  %vm289_vm4 = vcmask 15360  }
  0x3c   : > { %755 = vmatprep.mubr.msk.f32.mxu1 %vm954_vm2, %v953_v0  ;;  %763 = vmatprep.subr.mxu1 %v953_v0  ;;  %v529_v6 = vld [vmem:[%s1205_s2] sm:$0xf]  ;;  %v727_v11 = vld [vmem:[%s1204_s1 + $0x4] sm:$0xf]  ;;  %s737_s30 = sshll.u32 %s942_s21, 6  ;;  %s623_s21 = scalar_lea.sflag [#allocation5], %s1100_s25 }
  0x3d   : > { %756 = vmatmul.mubr.msk.f32.vlgmr.msra.gmra.mrb[0].mxu1 %vm291_vm3, %v726_v2  ;;  %835 = vset.pattern.permute.xlu0 %v955_v3  ;;  %v444_v14 = vld [vmem:[%s1204_s1] sm:$0xf]  ;;  %s1153_s11 = scalar_lea.hbm %s1208_s5, %s737_s30  ;;  %p1217_p9 = scmp.ne.s32.totalorder %s1212_s6, 0 }
  0x3e   : > { %765 = vmatprep.mubr.msk.f32.mxu1 %vm954_vm2, %v953_v0  ;;  %836 = vset.pattern.permute.xlu1 %v955_v3  ;;  %v538_v17 = vld [vmem:[%s1207_s4] sm:$0xf] }
  0x3f   : > { %v537_v27 = vld [vmem:[%s1206_s3] sm:$0xf] }
  0x41   : > { %v445_v4 = vld [vmem:[#allocation2] sm:$0xff] }
  0x42   : > { %448 = vrot.lane.b32.xlu1 %v445_v4, %s956_s16  ;;  %v447_v5 = vcombine.high %v445_v4, %v445_v4  ;;  %285 = vrot.lane.b32.xlu0 %v445_v4, %s957_s24 }
  0x46   : > { %450 = vrot.lane.b32.xlu1 %v447_v5, %s956_s16  ;;  %287 = vrot.lane.b32.xlu0 %v447_v5, %s957_s24  ;;  %s256_s16 = scalar_lea.vmem [#allocation6], %s724_s27  ;;  %s958_s27 = smov [#allocation6]  }
  0x47   : > { %s637_s24 = sshll.u32 %s256_s16, 4  ;;  %s872_s12 = sshll.u32 %s958_s27, 4  ;;  %s1155_s24 = int_to_ptr.vmem [resolvable:$true] %s637_s24  ;;  %s873_s12 = int_to_ptr.vmem [resolvable:$false] %s872_s12 }
  0x48   : > { %s868_s9 = scalar_lea.vmem %s1155_s24, 64  ;;  %s874_s13 = scalar_lea.vmem %s873_s12, 128 }
  0x49   : > { %p869_p8 = scmp.ne.s32.totalorder %s1155_s24, %s868_s9  ;;  %p875_p7 = scmp.lt.s32.totalorder %s1155_s24, %s873_s12 }
  0x4a   : > { %532 = vperm.xlu0 %835, %v529_v6   ;;  %541 = vperm.xlu1 %836, %v538_v17   ;;  %p876_p13 = scmp.lt.s32.totalorder %s874_s13, %s868_s9 }
  0x4b   : > { %p870_p11 = pnand %p869_p8, %p1217_p9 }
  0x4c   : > { %p877_p3 = por %p876_p13, %p875_p7 }
  0x4d   : > { %p871_p0 = pneg %p870_p11 }
  0x4f   : > { %p878_p6 = pnand %p877_p3, %p871_p0 }
  0xb4   : > { %v449_v7 = vpop.permute.xlu1 %448  ;;  %v286_v8 = vpop.permute.xlu0 %285 }
  0xb8   : > { %v451_v9 = vpop.permute.xlu1 %450  ;;  %v288_v10 = vpop.permute.xlu0 %287 }
  0xb9   : > { %v290_v12 = vsel %vm289_vm4, %v286_v8, %v288_v10  ;;  %v452_v13 = vsel %vm291_vm3, %v449_v7, %v451_v9 }
  0xba   : > { %749 = vmatpush3.msk.msra.mxu0 %vm295_vm1, %v290_v12 }
  0xbb   : > { %751 = vmatmul.mubr.msk.f32.vlgmr.msra.gmra.mrb[0].mxu0 %vm291_vm3, %v727_v11  ;;  %758 = vmatprep.subr.mxu0 %v953_v0 }
  0xbc   : > { %759 = vmatpush3.msk.msra.mxu0 %vm295_vm1, %v452_v13  ;;  %760 = vmatprep.mubr.msk.f32.mxu0 %vm954_vm2, %v953_v0 }
  0xbf   : > { %761 = vmatmul.mubr.msk.f32.vlgmr.msra.gmra.mrb[2].mxu0 %vm291_vm3, %v444_v14 }
  0xc9   : > { %v533_v22 = vpop.permute.xlu0 %532  ;;  %v542_v28 = vpop.permute.xlu1 %541 }
 0x110   : > { %v440_v15 = vpop.f32.mrb[0].mxu1 }
 0x111   : > { %v757_v16 = vpop.f32.mrb[1].mxu1 }
 0x18e   : > { %v364_v18 = vpop.f32.mrb[0].mxu0 }
 0x18f   : > { %v441_v19 = vadd.f32 %v440_v15, %v364_v18  ;;  %v752_v20 = vpop.f32.mrb[1].mxu0 }
 0x192   : > { %v524_v21 = vpop.f32.mrb[2].mxu0 }
 0x193   : > { %v528_v23 = vadd.f32 %v524_v21, %v441_v19  ;;  %v762_v24 = vpop.f32.mrb[3].mxu0 }
 0x195   : > { %v535_v25 = vadd.f32 %v533_v22, %v528_v23 }
 0x197   : > { %v536_v26 = vmax.f32 %v535_v25, 0.0 }
 0x199   : > { %764 = vmatpush3.msk.msra.mxu1 %vm295_vm1, %v536_v26 }
 0x19a   : > { %766 = vmatmul.mubr.msk.f32.vlgmr.msra.gmra.mrb[2].mxu1 %vm291_vm3, %v537_v27 }
 0x26d   : > { %v616_v29 = vpop.f32.mrb[2].mxu1 }
 0x26e   : > { %v617_v30 = vadd.f32 %v616_v29, %v542_v28  ;;  %v767_v31 = vpop.f32.mrb[3].mxu1 }
 0x270   : > { %v620_v32 = vadd.f32 %v617_v30, %v1110_v1 }
 0x272   : > { %621 = vst.msk [vmem:[%s256_s16] sm:$0xf] %vm276_vm0, %v620_v32 }
 0x273   : > { %881 = shalt.err (!%p878_p6)
}
 0x274   : > { %s882_s25 = scalar_lea.hbm %s1153_s11, 64  ;;  %s886_s17 = scalar_lea.hbm %s1208_s5, 128 }
 0x275   : > { %p883_p4 = scmp.ne.s32.totalorder %s1153_s11, %s882_s25  ;;  %p887_p1 = scmp.lt.u32.totalorder %s1153_s11, %s1208_s5 }
 0x276   : > { %p888_p2 = scmp.lt.u32.totalorder %s886_s17, %s882_s25  ;;  %p890_p8 = scmp.lt.u32.totalorder %s882_s25, %s1153_s11 }
 0x277   : > { %p884_p10 = pnand %p883_p4, %p1217_p9 }
 0x278   : > { %p889_p5 = por %p888_p2, %p887_p1 }
 0x279   : > { %p885_p12 = pneg %p884_p10 }
 0x27a   : > { %p891_p11 = por %p890_p8, %p889_p5 }
 0x27c   : > { %p892_p0 = pnand %p891_p11, %p885_p12 }
 0x27e   : > { %895 = shalt.err (!%p892_p0)
}
 0x27f   : > { %770 = dma.vmem_to_hbm [thread:$0]  (%p1217_p9), %s1155_s24, 64, %s1153_s11, %s623_s21  }
 0x280 PF: > { %s649_s16 = sand.u32 1, %s930_s18   ;;  %p1218_p7 = scmp.ne.s32.totalorder %s1213_s8, 0 }
 0x281   : > { %p1219_p13 = scmp.ge.s32.totalorder %s950_s23, 2  ;;  %s650_s28 = scalar_lea.sflag [#allocation5], %s649_s16 }
 0x283   : > { %p777_p3 = pnand %p1219_p13, %p1218_p7 }
 0x285   : > { %925 = dma.done.wait (!%p777_p3), %s650_s28, 64  }
 0x286   : > { %927 = vsyncadd (!%p777_p3), %s650_s28, 4294967232  ;;  %s21_s23 = sadd.s32 1, %s950_s23   ;;  %s1220_s18 = smov %s934_s19 }
 0x287   : > { %p18_p6 = scmp.ge.s32.totalorder %s21_s23, 4   ;;  %s1221_s19 = smov %s938_s20 }
 0x288   : > { %s1222_s20 = smov %s1045_s7  ;;  %s1223_s21 = smov %s946_s22 }
 0x289   : > { %s1224_s22 = smov %s1226_s26  ;;  %20 = sbr.rel (!%p18_p6) target bundleno = 6 (0x6), region = 95 }
 0x290   :  { %655 = vsyncpa [#allocation4], 1 }
 0x291   :  { %657 = vsyncpa [#allocation4 + $0x1], 1 }
 0x292   :  { %658 = vsyncpa [#allocation5], 1 }
 0x293   :  { %660 = vsyncpa [#allocation5 + $0x1], 1 }

</bundles_post_ra>
